<compile_context>
chip_gen: v6e
topology: v6e:2x2x1
jax: 0.10.0
libtpu: 0.0.40
codegen_flags: <defaults>
</compile_context>

<pallas_src>
import functools

import jax
import jax.numpy as jnp
import numpy as np
from jax import lax
from jax.experimental import pallas as pl
from jax.experimental.pallas import tpu as pltpu


def _round_up(x, m):
    return (x + m - 1) // m * m


def _choose_tile(b_pad, batch_tile):
    """Largest multiple of 128 that divides b_pad, is <= batch_tile, and (when there is
    enough batch) leaves >= 2 grid steps so the parallel axis keeps both v7x TCs busy."""
    t_max = min(batch_tile, b_pad)
    if b_pad >= 256:
        t_max = min(t_max, max(128, (b_pad // 2) // 128 * 128))
    m = b_pad // 128
    for d in range(t_max // 128, 0, -1):
        if m % d == 0:
            return 128 * d
    return 128


def _mlp_kernel(x_ref, w1t_ref, b1_ref, w2t_ref, b2_ref, w3t_ref, b3_ref,
                w4c_ref, b4_ref, o_ref):
    """One batch tile, fully fused; activations are [features, T] (batch on lanes)."""
    x = x_ref[...]                                     # [T, in]  f32

    # Layer 1: [h1, in] contract [T, in] over `in` -> [h1, T]  (MXU, f32 accumulation)
    h = lax.dot_general(w1t_ref[...], x,
                        dimension_numbers=(((1,), (1,)), ((), ())),
                        preferred_element_type=jnp.float32) + b1_ref[...]
    h = jnp.maximum(h, 0.0)                            # ReLU
    # TODO(synk): nn.Dropout implemented as eval-mode identity; training-mode masking
    #             would need pltpu.prng_seed + pltpu.prng_random_bits.

    # Layer 2: [h2, h1] @ [h1, T] -> [h2, T]  (canonical matmul)
    h = lax.dot_general(w2t_ref[...], h,
                        dimension_numbers=(((1,), (0,)), ((), ())),
                        preferred_element_type=jnp.float32) + b2_ref[...]
    h = jnp.maximum(h, 0.0)

    # Layer 3: [h3, h2] @ [h2, T] -> [h3, T]
    h = lax.dot_general(w3t_ref[...], h,
                        dimension_numbers=(((1,), (0,)), ((), ())),
                        preferred_element_type=jnp.float32) + b3_ref[...]
    h = jnp.maximum(h, 0.0)

    # Layer 4 (out_features=1): VPU broadcast-multiply + sublane reduce instead of an
    # M=1 MXU matmul (avoids full stationary-load/drain latency for 16 useful MACs).
    out_row = jnp.sum(w4c_ref[...] * h, axis=0, keepdims=True) + b4_ref[...]
    o_ref[...] = out_row.astype(o_ref.dtype)           # [1, T] lane-dense store


@functools.partial(jax.jit, static_argnames=("batch_tile",))
def cmapssfnn_forward(x, params, *, batch_tile=4096):
    """x: [B, input_sz] f32. params: w1..w4 stored [in, out], b1..b4 stored [1, out]."""
    assert batch_tile % 128 == 0, "batch_tile must be a multiple of 128 (lane width)"
    B, in_sz = x.shape

    # Tiny trace-time transposes so everything inside the kernel is lane-dense.
    w1t = params["w1"].T                  # [h1, in]
    w2t = params["w2"].T                  # [h2, h1]
    w3t = params["w3"].T                  # [h3, h2]
    w4c = params["w4"]                    # [h3, 1]  (already a column)
    b1 = params["b1"].T                   # [h1, 1]
    b2 = params["b2"].T                   # [h2, 1]
    b3 = params["b3"].T                   # [h3, 1]
    b4 = params["b4"].T                   # [1, 1]

    # Pad only to the next multiple of 128; tile divides b_pad exactly, so already
    # 128-aligned batches never pay an extra HBM pad copy of x.
    b_pad = _round_up(B, 128)
    if b_pad != B:
        x = jnp.pad(x, ((0, b_pad - B), (0, 0)))   # padded rows are sliced off below
    tile = _choose_tile(b_pad, batch_tile)
    num_tiles = b_pad // tile

    h1, h2, h3 = w1t.shape[0], w2t.shape[0], w3t.shape[0]
    flops = 2 * b_pad * (in_sz * h1 + h1 * h2 + h2 * h3 + h3)
    param_bytes = sum(int(np.prod(p.shape)) * p.dtype.itemsize
                      for p in (w1t, b1, w2t, b2, w3t, b3, w4c, b4))
    bytes_accessed = (b_pad * in_sz * x.dtype.itemsize   # x read
                      + b_pad * x.dtype.itemsize         # out write
                      + param_bytes)

    def const_spec(arr):
        # Whole (tiny) parameter array resident in VMEM for every grid step.
        return pl.BlockSpec(arr.shape, lambda i: (0, 0))

    out_flat = pl.pallas_call(
        _mlp_kernel,
        out_shape=jax.ShapeDtypeStruct((1, b_pad), x.dtype),
        grid=(num_tiles,),
        in_specs=[
            pl.BlockSpec((tile, in_sz), lambda i: (i, 0)),
            const_spec(w1t), const_spec(b1),
            const_spec(w2t), const_spec(b2),
            const_spec(w3t), const_spec(b3),
            const_spec(w4c), const_spec(b4),
        ],
        out_specs=pl.BlockSpec((1, tile), lambda i: (0, i)),
        compiler_params=pltpu.CompilerParams(
            dimension_semantics=("parallel",),        # shards tiles across v7x's 2 TCs
            vmem_limit_bytes=32 * 1024 * 1024),       # safe on v5e/v6e/v7x
        cost_estimate=pl.CostEstimate(
            flops=flops, transcendentals=0, bytes_accessed=bytes_accessed),
    )(x, w1t, b1, w2t, b2, w3t, b3, w4c, b4)

    # (1, b_pad) lane-dense slab -> (B, 1) column, dropping padded rows.
    return out_flat.reshape(b_pad, 1)[:B]


def init_params(key, input_sz, structure):
    """PyTorch-Linear-style init: uniform(-1/sqrt(fan_in), +1/sqrt(fan_in))."""
    dims = [input_sz, structure[0], structure[1], structure[2], 1]
    params = {}
    for li in range(4):
        fan_in, fan_out = dims[li], dims[li + 1]
        key, kw, kb = jax.random.split(key, 3)
        bound = 1.0 / np.sqrt(fan_in)
        params[f"w{li+1}"] = jax.random.uniform(
            kw, (fan_in, fan_out), jnp.float32, -bound, bound)
        params[f"b{li+1}"] = jax.random.uniform(
            kb, (1, fan_out), jnp.float32, -bound, bound)
    return params


def reference_forward(x, params):
    h = x
    for li in range(1, 4):
        h = jnp.maximum(h @ params[f"w{li}"] + params[f"b{li}"], 0.0)
    return h @ params["w4"] + params["b4"]


if __name__ == "__main__":
    # mc = {'input_sz': 24, 'structure': [32, 32, 16], 'activation': 'ReLU', 'dropout': 0.1}
    input_sz = 24
    structure = [32, 32, 16]
    batch = 16  # small demo batch; wrapper pads to one lane-dense 128-row tile

    key = jax.random.PRNGKey(0)
    key, kx = jax.random.split(key)
    x = jax.random.normal(kx, (batch, input_sz), jnp.float32)
    params = init_params(key, input_sz, structure)

    out = cmapssfnn_forward(x, params)
    out = jax.block_until_ready(out)

    ref = reference_forward(x, params)
    assert out.shape == (batch, 1)
    np.testing.assert_allclose(np.asarray(out), np.asarray(ref), rtol=1e-4, atol=1e-4)

    print("KERNEL_OK")
</pallas_src>

<mosaic_0001>
module attributes {stable_mosaic.version = 11 : i64} {
  func.func @_mlp_kernel(%arg0: i32, %arg1: memref<128x24xf32, #tpu.memory_space<vmem>>, %arg2: memref<32x24xf32, #tpu.memory_space<vmem>>, %arg3: memref<32x1xf32, #tpu.memory_space<vmem>>, %arg4: memref<32x32xf32, #tpu.memory_space<vmem>>, %arg5: memref<32x1xf32, #tpu.memory_space<vmem>>, %arg6: memref<16x32xf32, #tpu.memory_space<vmem>>, %arg7: memref<16x1xf32, #tpu.memory_space<vmem>>, %arg8: memref<16x1xf32, #tpu.memory_space<vmem>>, %arg9: memref<1x1xf32, #tpu.memory_space<vmem>>, %arg10: memref<1x128xf32, #tpu.memory_space<vmem>>) attributes {dimension_semantics = [#tpu.dimension_semantics<parallel>], iteration_bounds = array<i64: 1>, scalar_prefetch = 0 : i64, scratch_operands = 0 : i64, tpu.core_type = #tpu.core_type<tc>, window_params = [{transform_indices = @transform_0, window_bounds = array<i64: 128, 24>}, {pipeline_mode = #tpu.pipeline_mode<synchronous>, transform_indices = @transform_1, window_bounds = array<i64: 32, 24>}, {pipeline_mode = #tpu.pipeline_mode<synchronous>, transform_indices = @transform_2, window_bounds = array<i64: 32, 1>}, {pipeline_mode = #tpu.pipeline_mode<synchronous>, transform_indices = @transform_3, window_bounds = array<i64: 32, 32>}, {pipeline_mode = #tpu.pipeline_mode<synchronous>, transform_indices = @transform_4, window_bounds = array<i64: 32, 1>}, {pipeline_mode = #tpu.pipeline_mode<synchronous>, transform_indices = @transform_5, window_bounds = array<i64: 16, 32>}, {pipeline_mode = #tpu.pipeline_mode<synchronous>, transform_indices = @transform_6, window_bounds = array<i64: 16, 1>}, {pipeline_mode = #tpu.pipeline_mode<synchronous>, transform_indices = @transform_7, window_bounds = array<i64: 16, 1>}, {pipeline_mode = #tpu.pipeline_mode<synchronous>, transform_indices = @transform_8, window_bounds = array<i64: 1, 1>}, {transform_indices = @transform_9, window_bounds = array<i64: 1, 128>}]} {
    %c0 = arith.constant 0 : index
    %c0_0 = arith.constant 0 : index
    %0 = vector.load %arg1[%c0, %c0_0] : memref<128x24xf32, #tpu.memory_space<vmem>>, vector<128x24xf32>
    %c0_1 = arith.constant 0 : index
    %c0_2 = arith.constant 0 : index
    %1 = vector.load %arg2[%c0_1, %c0_2] : memref<32x24xf32, #tpu.memory_space<vmem>>, vector<32x24xf32>
    %cst = arith.constant dense<0.000000e+00> : vector<32x128xf32>
    %2 = tpu.matmul %1, %0, %cst {dimension_numbers = #tpu.dot_dimension_numbers<[1], [1], [0], [0], [0, 0, 1, 0], [], []>} : vector<32x24xf32>, vector<128x24xf32>, vector<32x128xf32> -> vector<32x128xf32>
    %c0_3 = arith.constant 0 : index
    %c0_4 = arith.constant 0 : index
    %3 = vector.load %arg3[%c0_3, %c0_4] : memref<32x1xf32, #tpu.memory_space<vmem>>, vector<32x1xf32>
    %4 = vector.broadcast %3 : vector<32x1xf32> to vector<32x128xf32>
    %5 = arith.addf %2, %4 : vector<32x128xf32>
    %cst_5 = arith.constant 0.000000e+00 : f32
    %6 = vector.broadcast %cst_5 : f32 to vector<32x128xf32>
    %7 = arith.maximumf %5, %6 : vector<32x128xf32>
    %c0_6 = arith.constant 0 : index
    %c0_7 = arith.constant 0 : index
    %8 = vector.load %arg4[%c0_6, %c0_7] : memref<32x32xf32, #tpu.memory_space<vmem>>, vector<32x32xf32>
    %cst_8 = arith.constant dense<0.000000e+00> : vector<32x128xf32>
    %9 = tpu.matmul %8, %7, %cst_8 {dimension_numbers = #tpu.dot_dimension_numbers<[1], [0], [0], [1], [0, 0, 1, 1], [], []>} : vector<32x32xf32>, vector<32x128xf32>, vector<32x128xf32> -> vector<32x128xf32>
    %c0_9 = arith.constant 0 : index
    %c0_10 = arith.constant 0 : index
    %10 = vector.load %arg5[%c0_9, %c0_10] : memref<32x1xf32, #tpu.memory_space<vmem>>, vector<32x1xf32>
    %11 = vector.broadcast %10 : vector<32x1xf32> to vector<32x128xf32>
    %12 = arith.addf %9, %11 : vector<32x128xf32>
    %cst_11 = arith.constant 0.000000e+00 : f32
    %13 = vector.broadcast %cst_11 : f32 to vector<32x128xf32>
    %14 = arith.maximumf %12, %13 : vector<32x128xf32>
    %c0_12 = arith.constant 0 : index
    %c0_13 = arith.constant 0 : index
    %15 = vector.load %arg6[%c0_12, %c0_13] : memref<16x32xf32, #tpu.memory_space<vmem>>, vector<16x32xf32>
    %cst_14 = arith.constant dense<0.000000e+00> : vector<16x128xf32>
    %16 = tpu.matmul %15, %14, %cst_14 {dimension_numbers = #tpu.dot_dimension_numbers<[1], [0], [0], [1], [0, 0, 1, 1], [], []>} : vector<16x32xf32>, vector<32x128xf32>, vector<16x128xf32> -> vector<16x128xf32>
    %c0_15 = arith.constant 0 : index
    %c0_16 = arith.constant 0 : index
    %17 = vector.load %arg7[%c0_15, %c0_16] : memref<16x1xf32, #tpu.memory_space<vmem>>, vector<16x1xf32>
    %18 = vector.broadcast %17 : vector<16x1xf32> to vector<16x128xf32>
    %19 = arith.addf %16, %18 : vector<16x128xf32>
    %cst_17 = arith.constant 0.000000e+00 : f32
    %20 = vector.broadcast %cst_17 : f32 to vector<16x128xf32>
    %21 = arith.maximumf %19, %20 : vector<16x128xf32>
    %c0_18 = arith.constant 0 : index
    %c0_19 = arith.constant 0 : index
    %22 = vector.load %arg8[%c0_18, %c0_19] : memref<16x1xf32, #tpu.memory_space<vmem>>, vector<16x1xf32>
    %23 = vector.broadcast %22 : vector<16x1xf32> to vector<16x128xf32>
    %24 = arith.mulf %23, %21 : vector<16x128xf32>
    %cst_20 = arith.constant dense<0.000000e+00> : vector<128xf32>
    %25 = vector.multi_reduction <add>, %24, %cst_20 [0] : vector<16x128xf32> to vector<128xf32>
    %26 = vector.shape_cast %25 : vector<128xf32> to vector<1x128xf32>
    %c0_21 = arith.constant 0 : index
    %c0_22 = arith.constant 0 : index
    %27 = vector.load %arg9[%c0_21, %c0_22] : memref<1x1xf32, #tpu.memory_space<vmem>>, vector<1x1xf32>
    %28 = vector.broadcast %27 : vector<1x1xf32> to vector<1x128xf32>
    %29 = arith.addf %26, %28 : vector<1x128xf32>
    %c0_23 = arith.constant 0 : index
    %c0_24 = arith.constant 0 : index
    %30 = vector.load %arg10[%c0_23, %c0_24] : memref<1x128xf32, #tpu.memory_space<vmem>>, vector<1x128xf32>
    tpu.vector_store %arg10[%c0_23, %c0_24], %29 {strides = array<i32>} : memref<1x128xf32, #tpu.memory_space<vmem>>, vector<1x128xf32>,
    return
  }
  func.func @transform_0(%arg0: i32) -> (i32, i32) {
    %c0_i32 = arith.constant 0 : i32
    %c0_i32_0 = arith.constant 0 : i32
    return %arg0, %c0_i32 : i32, i32
  }
  func.func @transform_1(%arg0: i32) -> (i32, i32) {
    %c0_i32 = arith.constant 0 : i32
    %c0_i32_0 = arith.constant 0 : i32
    %c0_i32_1 = arith.constant 0 : i32
    return %c0_i32, %c0_i32_0 : i32, i32
  }
  func.func @transform_2(%arg0: i32) -> (i32, i32) {
    %c0_i32 = arith.constant 0 : i32
    %c0_i32_0 = arith.constant 0 : i32
    %c0_i32_1 = arith.constant 0 : i32
    return %c0_i32, %c0_i32_0 : i32, i32
  }
  func.func @transform_3(%arg0: i32) -> (i32, i32) {
    %c0_i32 = arith.constant 0 : i32
    %c0_i32_0 = arith.constant 0 : i32
    %c0_i32_1 = arith.constant 0 : i32
    return %c0_i32, %c0_i32_0 : i32, i32
  }
  func.func @transform_4(%arg0: i32) -> (i32, i32) {
    %c0_i32 = arith.constant 0 : i32
    %c0_i32_0 = arith.constant 0 : i32
    %c0_i32_1 = arith.constant 0 : i32
    return %c0_i32, %c0_i32_0 : i32, i32
  }
  func.func @transform_5(%arg0: i32) -> (i32, i32) {
    %c0_i32 = arith.constant 0 : i32
    %c0_i32_0 = arith.constant 0 : i32
    %c0_i32_1 = arith.constant 0 : i32
    return %c0_i32, %c0_i32_0 : i32, i32
  }
  func.func @transform_6(%arg0: i32) -> (i32, i32) {
    %c0_i32 = arith.constant 0 : i32
    %c0_i32_0 = arith.constant 0 : i32
    %c0_i32_1 = arith.constant 0 : i32
    return %c0_i32, %c0_i32_0 : i32, i32
  }
  func.func @transform_7(%arg0: i32) -> (i32, i32) {
    %c0_i32 = arith.constant 0 : i32
    %c0_i32_0 = arith.constant 0 : i32
    %c0_i32_1 = arith.constant 0 : i32
    return %c0_i32, %c0_i32_0 : i32, i32
  }
  func.func @transform_8(%arg0: i32) -> (i32, i32) {
    %c0_i32 = arith.constant 0 : i32
    %c0_i32_0 = arith.constant 0 : i32
    %c0_i32_1 = arith.constant 0 : i32
    return %c0_i32, %c0_i32_0 : i32, i32
  }
  func.func @transform_9(%arg0: i32) -> (i32, i32) {
    %c0_i32 = arith.constant 0 : i32
    %c0_i32_0 = arith.constant 0 : i32
    return %c0_i32, %arg0 : i32, i32
  }
}

</mosaic_0001>

<bundles_post_ra>
// kernel: cmapssfnn_forward.1
= control target key start
LH: loop header
LB: loop body
LE: loop exit
PB: predicated region body
PF: predicated region fallthrough
CT: control target
= control target key end

     0   :  { %vm78_vm0 = vcmask 195584   ;;  %v618_v2 = vmov 0   ;;  %vm256_vm1 = vcmask 261120   ;;  %s831_s0 = inlined_call_operand.vmem [shape: f32[128,24], index: 0, kind: input, shape index: {}]   ;;  %s832_s8 = inlined_call_operand.<no memory space> [shape: f32[1,1], index: 8, kind: input, shape index: {}]   ;;  %s833_s1 = inlined_call_operand.vmem [shape: f32[32,24], index: 1, kind: input, shape index: {}]   ;;  %s834_s2 = inlined_call_operand.vmem [shape: f32[32,1], index: 2, kind: input, shape index: {}]   ;;  %s835_s4 = inlined_call_operand.vmem [shape: f32[32,1], index: 4, kind: input, shape index: {}]   ;;  %s836_s6 = inlined_call_operand.vmem [shape: f32[16,1], index: 6, kind: input, shape index: {}]   ;;  %s837_s7 = inlined_call_operand.vmem [shape: f32[16,1], index: 7, kind: input, shape index: {}]   ;;  %s838_s3 = inlined_call_operand.vmem [shape: f32[32,32], index: 3, kind: input, shape index: {}]   ;;  %s839_s5 = inlined_call_operand.vmem [shape: f32[16,32], index: 5, kind: input, shape index: {}]   ;;  %s840_s9 = inlined_call_operand.vmem [shape: f32[1,128], index: 9, kind: output, shape index: {}]  }
   0x1   :  { %v49_v0 = vld [vmem:[%s831_s0 + $0x78] sm:$0xff]  ;;  %v48_v1 = vld [vmem:[%s831_s0 + $0x70] sm:$0xff]  ;;  %616 = vset.pattern.permute.xlu0 %v618_v2  ;;  %617 = vset.pattern.permute.xlu1 %v618_v2  ;;  %v14_v3 = vstv %s832_s8  ;;  %v47_v4 = vld [vmem:[%s831_s0 + $0x68] sm:$0xff] }
   0x2   :  { %552 = vmatprep.subr.msk.mxu0 %vm78_vm0, %v49_v0  ;;  %15 = vst [vmem:[#allocation2] sm:$0x1] %v14_v3  ;;  %v50_v5 = vld [vmem:[%s833_s1] sm:$0xff]  ;;  %v57_v6 = vld [vmem:[%s834_s2 + $0x18] sm:$0xff]  ;;  %v55_v7 = vld [vmem:[%s834_s2 + $0x8] sm:$0xff] }
   0x3   :  { %553 = vmatpush3.xpose.msk.msra.mxu0 %vm78_vm0, %v49_v0  ;;  %584 = vmatprep.mubr.msk.f32.mxu0 %vm78_vm0, %v50_v5  ;;  %v46_v8 = vld [vmem:[%s831_s0 + $0x60] sm:$0xff]  ;;  %v56_v9 = vld [vmem:[%s834_s2 + $0x10] sm:$0xff]  ;;  %v45_v11 = vld [vmem:[%s831_s0 + $0x58] sm:$0xff] }
   0x4   :  { %554 = vmatprep.subr.msk.mxu0 %vm78_vm0, %v48_v1  ;;  %75 = vperm.xlu0 %616, %v57_v6   ;;  %v54_v10 = vld [vmem:[%s834_s2] sm:$0xff]  ;;  %v235_v12 = vld [vmem:[%s835_s4 + $0x18] sm:$0xff]  ;;  %v234_v13 = vld [vmem:[%s835_s4 + $0x10] sm:$0xff] }
   0x5   :  { %65 = vperm.xlu1 %617, %v55_v7   ;;  %v44_v14 = vld [vmem:[%s831_s0 + $0x50] sm:$0xff]  ;;  %v233_v15 = vld [vmem:[%s835_s4 + $0x8] sm:$0xff]  ;;  %v232_v16 = vld [vmem:[%s835_s4] sm:$0xff] }
   0x6   :  { %v43_v17 = vld [vmem:[%s831_s0 + $0x48] sm:$0xff]  ;;  %v360_v18 = vld [vmem:[%s836_s6] sm:$0xff]  ;;  %v41_v23 = vld [vmem:[%s831_s0 + $0x38] sm:$0xff] }
   0x7   :  { %555 = vmatpush3.xpose.msk.msra.mxu0 %vm78_vm0, %v48_v1  ;;  %v361_v19 = vld [vmem:[%s836_s6 + $0x8] sm:$0xff]  ;;  %v42_v20 = vld [vmem:[%s831_s0 + $0x40] sm:$0xff]  ;;  %v40_v25 = vld [vmem:[%s831_s0 + $0x30] sm:$0xff] }
   0x8   :  { %556 = vmatprep.subr.msk.mxu0 %vm78_vm0, %v47_v4  ;;  %70 = vperm.xlu0 %616, %v56_v9   ;;  %v455_v21 = vld [vmem:[%s837_s7] sm:$0xff]  ;;  %v456_v22 = vld [vmem:[%s837_s7 + $0x8] sm:$0xff]  ;;  %v37_v28 = vld [vmem:[%s831_s0 + $0x18] sm:$0xff] }
   0x9   :  { %60 = vperm.xlu1 %617, %v54_v10   ;;  %v476_v24 = vld [vmem:[#allocation2] sm:$0x1]  ;;  %v39_v26 = vld [vmem:[%s831_s0 + $0x28] sm:$0xff]  ;;  %v36_v29 = vld [vmem:[%s831_s0 + $0x10] sm:$0xff] }
   0xa   :  { %v38_v27 = vld [vmem:[%s831_s0 + $0x20] sm:$0xff]  ;;  %v35_v30 = vld [vmem:[%s831_s0 + $0x8] sm:$0xff]  ;;  %v52_v33 = vld [vmem:[%s833_s1 + $0x10] sm:$0xff] }
   0xb   :  { %557 = vmatpush3.xpose.msk.msra.mxu0 %vm78_vm0, %v47_v4  ;;  %v34_v31 = vld [vmem:[%s831_s0] sm:$0xff]  ;;  %v51_v32 = vld [vmem:[%s833_s1 + $0x8] sm:$0xff]  ;;  %v53_v34 = vld [vmem:[%s833_s1 + $0x18] sm:$0xff] }
   0xc   :  { %558 = vmatprep.subr.msk.mxu0 %vm78_vm0, %v46_v8  ;;  %253 = vperm.xlu0 %616, %v235_v12   ;;  %v228_v35 = vld [vmem:[%s838_s3] sm:$0xff]  ;;  %v229_v52 = vld [vmem:[%s838_s3 + $0x8] sm:$0xff]  ;;  %v230_v53 = vld [vmem:[%s838_s3 + $0x10] sm:$0xff] }
   0xd   :  { %248 = vperm.xlu1 %617, %v234_v13   ;;  %598 = vmatprep.mubr.msk.f32.mxu1 %vm256_vm1, %v228_v35  ;;  %v231_v54 = vld [vmem:[%s838_s3 + $0x18] sm:$0xff]  ;;  %v358_v55 = vld [vmem:[%s839_s5] sm:$0xff] }
   0xf   :  { %559 = vmatpush3.xpose.msk.msra.mxu0 %vm78_vm0, %v46_v8  ;;  %v359_v8 = vld [vmem:[%s839_s5 + $0x8] sm:$0xff] }
  0x10   :  { %560 = vmatprep.subr.msk.mxu0 %vm78_vm0, %v45_v11  ;;  %243 = vperm.xlu0 %616, %v233_v15  }
  0x11   :  { %238 = vperm.xlu1 %617, %v232_v16  }
  0x13   :  { %561 = vmatpush3.xpose.msk.msra.mxu0 %vm78_vm0, %v45_v11 }
  0x14   :  { %562 = vmatprep.subr.msk.mxu0 %vm78_vm0, %v44_v14  ;;  %364 = vperm.xlu0 %616, %v360_v18  }
  0x15   :  { %369 = vperm.xlu1 %617, %v361_v19  }
  0x17   :  { %563 = vmatpush3.xpose.msk.msra.mxu0 %vm78_vm0, %v44_v14 }
  0x18   :  { %564 = vmatprep.subr.msk.mxu0 %vm78_vm0, %v43_v17  ;;  %459 = vperm.xlu0 %616, %v455_v21   ;;  %v482_v21 = vlaneseq }
  0x19   :  { %464 = vperm.xlu1 %617, %v456_v22  }
  0x1b   :  { %565 = vmatpush3.xpose.msk.msra.mxu0 %vm78_vm0, %v43_v17 }
  0x1c   :  { %566 = vmatprep.subr.msk.mxu0 %vm78_vm0, %v42_v20  ;;  %479 = vperm.xlu0 %616, %v476_v24   ;;  %v483_v24 = vshrl.u32 %v482_v21, 7 }
  0x1f   :  { %567 = vmatpush3.xpose.msk.msra.mxu0 %vm78_vm0, %v42_v20 }
  0x20   :  { %568 = vmatprep.subr.msk.mxu0 %vm78_vm0, %v41_v23 }
  0x23   :  { %569 = vmatpush3.xpose.msk.msra.mxu0 %vm78_vm0, %v41_v23 }
  0x24   :  { %570 = vmatprep.subr.msk.mxu0 %vm78_vm0, %v40_v25 }
  0x27   :  { %571 = vmatpush3.xpose.msk.msra.mxu0 %vm78_vm0, %v40_v25 }
  0x28   :  { %572 = vmatprep.subr.msk.mxu0 %vm78_vm0, %v39_v26 }
  0x2b   :  { %573 = vmatpush3.xpose.msk.msra.mxu0 %vm78_vm0, %v39_v26 }
  0x2c   :  { %574 = vmatprep.subr.msk.mxu0 %vm78_vm0, %v38_v27 }
  0x2f   :  { %575 = vmatpush3.xpose.msk.msra.mxu0 %vm78_vm0, %v38_v27  ;;  %v484_v27 = vsub.s32 0, %v483_v24 }
  0x30   :  { %576 = vmatprep.subr.msk.mxu0 %vm78_vm0, %v37_v28 }
  0x33   :  { %577 = vmatpush3.xpose.msk.msra.mxu0 %vm78_vm0, %v37_v28 }
  0x34   :  { %578 = vmatprep.subr.msk.mxu0 %vm78_vm0, %v36_v29 }
  0x37   :  { %579 = vmatpush3.xpose.msk.msra.mxu0 %vm78_vm0, %v36_v29 }
  0x38   :  { %580 = vmatprep.subr.msk.mxu0 %vm78_vm0, %v35_v30 }
  0x3b   :  { %581 = vmatpush3.xpose.msk.msra.mxu0 %vm78_vm0, %v35_v30 }
  0x3c   :  { %582 = vmatprep.subr.msk.mxu0 %vm78_vm0, %v34_v31 }
  0x3f   :  { %583 = vmatpush3.xpose.msk.msra.mxu0 %vm78_vm0, %v34_v31 }
  0x42   :  { %585 = vmatmul.mubr.msk.f32.vlgmr.msra.gmra.mxu0 %vm78_vm0, %v51_v32 }
  0x43   :  { %587 = vmatprep.mubr.msk.f32.mxu0 %vm78_vm0, %v52_v33 }
  0x46   :  { %588 = vmatmul.mubr.msk.f32.gmra.mxu0 %vm78_vm0, %v53_v34 }
  0x7f   :  { %v76_v36 = vpop.permute.xlu0 %75 }
  0x80   :  { %v66_v38 = vpop.permute.xlu1 %65 }
  0x83   :  { %v71_v42 = vpop.permute.xlu0 %70 }
  0x84   :  { %v61_v47 = vpop.permute.xlu1 %60 }
  0x87   :  { %v254_v56 = vpop.permute.xlu0 %253 }
  0x88   :  { %v249_v58 = vpop.permute.xlu1 %248 }
  0x8b   :  { %v244_v62 = vpop.permute.xlu0 %243 }
  0x8c   :  { %v239_v3 = vpop.permute.xlu1 %238 }
  0x8f   :  { %v365_v9 = vpop.permute.xlu0 %364 }
  0x90   :  { %v370_v10 = vpop.permute.xlu1 %369 }
  0x93   :  { %v460_v17 = vpop.permute.xlu0 %459 }
  0x94   :  { %v465_v18 = vpop.permute.xlu1 %464 }
  0x97   :  { %v480_v29 = vpop.permute.xlu0 %479 }
  0x98   :  { %v485_v31 = vrot.slane %v480_v29, %v484_v27 }
 0x102   :  { %v586_v37 = vpop.f32.mrf.mxu0 }
 0x103   :  { %v211_v44 = vadd.f32 %v586_v37, %v66_v38 }
 0x104   :  { %v205_v39 = vpop.f32.mrf.mxu0 }
 0x105   :  { %v206_v48 = vadd.f32 %v205_v39, %v61_v47  ;;  %v225_v50 = vmax.f32 %v211_v44, 0.0 }
 0x106   :  { %v589_v40 = vpop.f32.mrf.mxu0 }
 0x107   :  { %v221_v41 = vadd.f32 %v589_v40, %v76_v36  ;;  %v224_v51 = vmax.f32 %v206_v48, 0.0 }
 0x108   :  { %v215_v43 = vpop.f32.mrf.mxu0 }
 0x109   :  { %v227_v45 = vmax.f32 %v221_v41, 0.0  ;;  %v216_v46 = vadd.f32 %v215_v43, %v71_v42 }
 0x10b   :  { %v226_v49 = vmax.f32 %v216_v46, 0.0  ;;  %590 = vmatprep.subr.mxu1 %v227_v45 }
 0x10c   :  { %591 = vmatpush3.msra.mxu1 %v227_v45 }
 0x10d   :  { %592 = vmatprep.subr.mxu1 %v226_v49 }
 0x10e   :  { %593 = vmatpush3.msra.mxu1 %v226_v49 }
 0x10f   :  { %594 = vmatprep.subr.mxu1 %v225_v50 }
 0x110   :  { %595 = vmatpush3.msra.mxu1 %v225_v50 }
 0x111   :  { %596 = vmatprep.subr.mxu1 %v224_v51 }
 0x112   :  { %597 = vmatpush3.msra.mxu1 %v224_v51 }
 0x113   :  { %599 = vmatmul.mubr.msk.f32.vlgmr.msra.gmra.mxu1 %vm256_vm1, %v229_v52 }
 0x114   :  { %601 = vmatprep.mubr.msk.f32.mxu1 %vm256_vm1, %v230_v53 }
 0x117   :  { %602 = vmatmul.mubr.msk.f32.gmra.mxu1 %vm256_vm1, %v231_v54 }
 0x118   :  { %612 = vmatprep.mubr.msk.f32.mxu1 %vm256_vm1, %v358_v55 }
 0x1d3   :  { %v600_v57 = vpop.f32.mrf.mxu1 }
 0x1d4   :  { %v341_v0 = vadd.f32 %v600_v57, %v244_v62 }
 0x1d5   :  { %v335_v59 = vpop.f32.mrf.mxu1 }
 0x1d6   :  { %v336_v4 = vadd.f32 %v335_v59, %v239_v3  ;;  %v355_v6 = vmax.f32 %v341_v0, 0.0 }
 0x1d7   :  { %v603_v60 = vpop.f32.mrf.mxu1 }
 0x1d8   :  { %v351_v61 = vadd.f32 %v603_v60, %v254_v56  ;;  %v354_v7 = vmax.f32 %v336_v4, 0.0 }
 0x1d9   :  { %v345_v63 = vpop.f32.mrf.mxu1 }
 0x1da   :  { %v357_v1 = vmax.f32 %v351_v61, 0.0  ;;  %v346_v2 = vadd.f32 %v345_v63, %v249_v58 }
 0x1dc   :  { %v356_v5 = vmax.f32 %v346_v2, 0.0  ;;  %604 = vmatprep.subr.mxu1 %v357_v1 }
 0x1dd   :  { %605 = vmatpush3.msra.mxu1 %v357_v1 }
 0x1de   :  { %606 = vmatprep.subr.mxu1 %v356_v5 }
 0x1df   :  { %607 = vmatpush3.msra.mxu1 %v356_v5 }
 0x1e0   :  { %608 = vmatprep.subr.mxu1 %v355_v6 }
 0x1e1   :  { %609 = vmatpush3.msra.mxu1 %v355_v6 }
 0x1e2   :  { %610 = vmatprep.subr.mxu1 %v354_v7 }
 0x1e3   :  { %611 = vmatpush3.msra.mxu1 %v354_v7 }
 0x1e4   :  { %613 = vmatmul.mubr.msk.f32.vlgmr.msra.gmra.mxu1 %vm256_vm1, %v359_v8 }
 0x2a4   :  { %v614_v11 = vpop.f32.mrf.mxu1 }
 0x2a5   :  { %v450_v12 = vadd.f32 %v614_v11, %v370_v10 }
 0x2a6   :  { %v444_v13 = vpop.f32.mrf.mxu1 }
 0x2a7   :  { %v454_v14 = vmax.f32 %v450_v12, 0.0  ;;  %v445_v15 = vadd.f32 %v444_v13, %v365_v9 }
 0x2a9   :  { %v453_v16 = vmax.f32 %v445_v15, 0.0  ;;  %v468_v19 = vmul.f32 %v465_v18, %v454_v14 }
 0x2ab   :  { %v467_v20 = vmul.f32 %v460_v17, %v453_v16 }
 0x2ad   :  { %v469_v22 = vadd.f32 %v468_v19, %v467_v20 }
 0x2af   :  { %v470_v23 = vrot.slane %v469_v22, 4 }
 0x2b1   :  { %v471_v25 = vadd.f32 %v470_v23, %v469_v22 }
 0x2b3   :  { %v472_v26 = vrot.slane %v471_v25, 2 }
 0x2b5   :  { %v473_v28 = vadd.f32 %v472_v26, %v471_v25 }
 0x2b7   :  { %v474_v30 = vrot.slane %v473_v28, 1 }
 0x2b9   :  { %v475_v32 = vadd.f32 %v474_v30, %v473_v28 }
 0x2bb   :  { %v486_v33 = vadd.f32 %v485_v31, %v475_v32 }
 0x2bd   :  { %487 = vst [vmem:[%s840_s9] sm:$0x1] %v486_v33 }

</bundles_post_ra>
